<compile_context>
chip_gen: v5e
topology: v5e:2x2
jax: 0.10.0
libtpu: 0.0.40
codegen_flags: <defaults>
</compile_context>

<pallas_src>
import functools

import jax
import jax.numpy as jnp
from jax import lax
from jax.experimental import pallas as pl
from jax.experimental.pallas import tpu as pltpu

K = 9          # conv kernel size
P = K // 2     # padding (halo) on each side


def _round_up(x, m):
    return ((x + m - 1) // m) * m


def _shift_amt(d, size, roll_is_jnp):
    """Rotation amount s such that roll(x, s, axis)[f] == x[(f + d) % size]."""
    return (-d if roll_is_jnp else d) % size


# ----------------------------------------------------------------------------
# tiny one-time probe: does pltpu.roll follow jnp.roll's shift direction?
# ----------------------------------------------------------------------------
def _roll_probe_kernel(x_ref, o_ref):
    o_ref[...] = pltpu.roll(x_ref[...], 1, 1)


@functools.lru_cache(maxsize=None)
def _roll_matches_jnp():
    x = lax.broadcasted_iota(jnp.float32, (8, 128), 1)
    out = pl.pallas_call(
        _roll_probe_kernel,
        out_shape=jax.ShapeDtypeStruct((8, 128), jnp.float32),
    )(x)
    # jnp.roll semantics: roll([0..127], 1)[0] == 127
    return bool(out[0, 0] == 127.0)


# ----------------------------------------------------------------------------
# kernel
# ----------------------------------------------------------------------------
def _sanet_kernel(x_ref, w11_ref, w12_ref, w21_ref, w22_ref,
                  b11_ref, b12_ref, b2_ref, mask_ref,
                  out_ref, s1_ref, s2_ref, *, H, W, WS, Ch, roll_is_jnp):
    f32 = jnp.float32
    Lwin = H * WS                    # output / compute window (lane-dense)

    # ---- zero only the P-row halos of the scratch slabs (interiors are fully
    #      overwritten every grid step, so this stays correct when the batch
    #      axis is sharded across TensorCores). ----
    zrows = jnp.zeros((Ch, P * WS), s1_ref.dtype)
    s1_ref[:, pl.ds(0, P * WS)] = zrows
    s1_ref[:, pl.ds((P + H) * WS, P * WS)] = zrows
    s2_ref[:, pl.ds(0, P * WS)] = zrows
    s2_ref[:, pl.ds((P + H) * WS, P * WS)] = zrows

    # ---- stage 1: conv1_1 ((1,K) along W) and conv1_2 ((K,1) along H).
    #      Per tap one bf16 channel-mixing MXU matmul, f32 accumulation.
    #      H-direction taps = lane-aligned slices (WS % 128 == 0);
    #      W-direction taps = a single aligned load + pltpu.roll (XLU). ----
    x_w = x_ref[0, :, pl.ds(P * WS, Lwin)]                 # (C, Lwin) bf16
    acc1 = jnp.zeros((Ch, Lwin), f32)
    acc2 = jnp.zeros((Ch, Lwin), f32)
    for kk in range(K):                                    # static, unrolled
        d = kk - P
        xk_w = x_w if d == 0 else pltpu.roll(
            x_w, _shift_amt(d, Lwin, roll_is_jnp), 1)
        xk_h = x_ref[0, :, pl.ds(kk * WS, Lwin)]           # aligned row shift
        acc1 = acc1 + jnp.dot(w11_ref[kk], xk_w, preferred_element_type=f32)
        acc2 = acc2 + jnp.dot(w12_ref[kk], xk_h, preferred_element_type=f32)

    relu1 = jnp.maximum(acc1 + b11_ref[...], 0.0)          # (Ch, Lwin) f32
    relu2 = jnp.maximum(acc2 + b12_ref[...], 0.0)

    # conv2_1 taps run along H -> s1 only needs zero ROW halos (done above);
    # garbage in its W-halo columns is never read for valid outputs.
    # conv2_2 taps run along W -> s2 needs zero column halos: mask before store.
    s1_ref[:, pl.ds(P * WS, Lwin)] = relu1.astype(s1_ref.dtype)
    s2_ref[:, pl.ds(P * WS, Lwin)] = (relu2 * mask_ref[...]).astype(s2_ref.dtype)

    # ---- stage 2 (tap-folded): one (K, Ch) @ (Ch, Hp*WS) matmul per branch,
    #      then shift-add the K result rows.  Row shifts of m1 are aligned
    #      slices; lane shifts of m2 are tiny (1, Lwin) rolls. ----
    m1 = jnp.dot(w21_ref[...], s1_ref[...], preferred_element_type=f32)
    m2 = jnp.dot(w22_ref[...], s2_ref[...], preferred_element_type=f32)

    acc = jnp.zeros((1, Lwin), f32) + b2_ref[0]            # b21 + b22 folded
    for kk in range(K):
        acc = acc + m1[kk:kk + 1, kk * WS:kk * WS + Lwin]  # aligned row shift
        d = kk - P
        row = m2[kk:kk + 1, P * WS:P * WS + Lwin]
        if d != 0:
            row = pltpu.roll(row, _shift_amt(d, Lwin, roll_is_jnp), 1)
        acc = acc + row

    out_ref[...] = jax.nn.sigmoid(acc)


# ----------------------------------------------------------------------------
# wrapper
# ----------------------------------------------------------------------------
def sanet_forward(x, params):
    N, C, H, W = x.shape
    Ch = C // 2
    WS = _round_up(W + 2 * P, 128)       # lane-aligned row stride
    Hp = H + 2 * P
    Lwin = H * WS
    f32, bf16 = jnp.float32, jnp.bfloat16
    w11, b11, w12, b12, w21, b21, w22, b22 = params

    # pad once (rows by P; cols by P plus lane-alignment filler), flatten, bf16.
    # TODO(synk): fuse this pad into the kernel (manual DMA) to avoid the HBM
    # round trip of the padded copy entirely.
    x_flat = jnp.pad(x.astype(bf16),
                     ((0, 0), (0, 0), (P, P), (P, WS - W - P))
                     ).reshape(N, C, Hp * WS)

    # per-tap channel-mixing weights (bf16 for native-rate MXU)
    w11_k = jnp.transpose(w11[:, :, 0, :], (2, 0, 1)).astype(bf16)   # (K, Ch, C)
    w12_k = jnp.transpose(w12[:, :, :, 0], (2, 0, 1)).astype(bf16)   # (K, Ch, C)
    w21_s = jnp.transpose(w21[0, :, :, 0], (1, 0)).astype(bf16)      # (K, Ch)
    w22_s = jnp.transpose(w22[0, :, 0, :], (1, 0)).astype(bf16)      # (K, Ch)
    b11_c = b11.reshape(Ch, 1).astype(f32)
    b12_c = b12.reshape(Ch, 1).astype(f32)
    b2 = (b21 + b22).reshape(1).astype(f32)
    # 1.0 on valid output columns (P <= col < P+W), 0.0 on halo columns (bf16)
    mask = (((jnp.arange(Lwin) % WS) >= P) &
            ((jnp.arange(Lwin) % WS) < P + W)).astype(bf16).reshape(1, Lwin)

    kernel = functools.partial(_sanet_kernel, H=H, W=W, WS=WS, Ch=Ch,
                               roll_is_jnp=_roll_matches_jnp())
    rep3 = lambda i: (0, 0, 0)
    rep2 = lambda i: (0, 0)
    smem = pl.BlockSpec(memory_space=pltpu.MemorySpace.SMEM)

    cost = pl.CostEstimate(
        flops=int(N) * 2 * K * H * W * (2 * Ch * C + 2 * Ch),
        transcendentals=int(N) * Lwin,
        bytes_accessed=int(x_flat.size) * 2 + int(N) * Lwin * 4,
    )

    grid_spec = pltpu.PrefetchScalarGridSpec(
        num_scalar_prefetch=0,
        grid=(N,),
        in_specs=[
            pl.BlockSpec((1, C, Hp * WS), lambda i: (i, 0, 0)),   # x, padded, bf16
            pl.BlockSpec((K, Ch, C), rep3),                       # w11 per tap
            pl.BlockSpec((K, Ch, C), rep3),                       # w12 per tap
            pl.BlockSpec((K, Ch), rep2),                          # w21, tap-stacked
            pl.BlockSpec((K, Ch), rep2),                          # w22, tap-stacked
            pl.BlockSpec((Ch, 1), rep2),                          # b11
            pl.BlockSpec((Ch, 1), rep2),                          # b12
            smem,                                                 # b21 + b22 scalar
            pl.BlockSpec((1, Lwin), rep2),                        # column mask (bf16)
        ],
        out_specs=pl.BlockSpec((1, Lwin), lambda i: (i, 0)),      # flat attention map
        scratch_shapes=[
            pltpu.VMEM((Ch, Hp * WS), bf16),   # relu(conv1_1), zero row halos
            pltpu.VMEM((Ch, Hp * WS), bf16),   # relu(conv1_2), zero col halos
        ],
    )
    flat = pl.pallas_call(
        kernel,
        out_shape=jax.ShapeDtypeStruct((N, Lwin), f32),
        grid_spec=grid_spec,
        compiler_params=pltpu.CompilerParams(
            dimension_semantics=("parallel",),
            vmem_limit_bytes=64 * 1024 * 1024),
        cost_estimate=cost,
    )(x_flat, w11_k, w12_k, w21_s, w22_s, b11_c, b12_c, b2, mask)

    # crop the halo columns; channel repeat stays a lazy XLA broadcast
    att = flat.reshape(N, H, WS)[:, :, P:P + W]
    return jnp.broadcast_to(att[:, None, :, :], (N, C, H, W))


# ----------------------------------------------------------------------------
# pure-JAX reference
# ----------------------------------------------------------------------------
def sanet_ref(x, params):
    w11, b11, w12, b12, w21, b21, w22, b22 = params
    dn = ('NCHW', 'OIHW', 'NCHW')
    hi = lax.Precision.HIGHEST
    c11 = lax.conv_general_dilated(x, w11, (1, 1), ((0, 0), (P, P)),
                                   dimension_numbers=dn, precision=hi)
    c11 = jax.nn.relu(c11 + b11[None, :, None, None])
    c12 = lax.conv_general_dilated(x, w12, (1, 1), ((P, P), (0, 0)),
                                   dimension_numbers=dn, precision=hi)
    c12 = jax.nn.relu(c12 + b12[None, :, None, None])
    c21 = lax.conv_general_dilated(c11, w21, (1, 1), ((P, P), (0, 0)),
                                   dimension_numbers=dn, precision=hi)
    c21 = c21 + b21[None, :, None, None]
    c22 = lax.conv_general_dilated(c12, w22, (1, 1), ((0, 0), (P, P)),
                                   dimension_numbers=dn, precision=hi)
    c22 = c22 + b22[None, :, None, None]
    c4 = jax.nn.sigmoid(c21 + c22)
    return jnp.repeat(c4, x.shape[1], axis=1)


if __name__ == "__main__":
    key = jax.random.PRNGKey(0)
    N, C, H, W = 2, 4, 16, 16
    Ch = C // 2
    ks = jax.random.split(key, 9)

    x = jax.random.normal(ks[0], (N, C, H, W), jnp.float32)
    # deterministic synthetic parameters (Conv2d shapes from __init__)
    w11 = jax.random.normal(ks[1], (Ch, C, 1, K), jnp.float32) * 0.1
    b11 = jax.random.normal(ks[2], (Ch,), jnp.float32) * 0.1
    w12 = jax.random.normal(ks[3], (Ch, C, K, 1), jnp.float32) * 0.1
    b12 = jax.random.normal(ks[4], (Ch,), jnp.float32) * 0.1
    w21 = jax.random.normal(ks[5], (1, Ch, K, 1), jnp.float32) * 0.1
    b21 = jax.random.normal(ks[6], (1,), jnp.float32) * 0.1
    w22 = jax.random.normal(ks[7], (1, Ch, 1, K), jnp.float32) * 0.1
    b22 = jax.random.normal(ks[8], (1,), jnp.float32) * 0.1
    params = (w11, b11, w12, b12, w21, b21, w22, b22)

    out = jax.block_until_ready(sanet_forward(x, params))
    ref = sanet_ref(x, params)

    assert out.shape == (N, C, H, W), out.shape
    # bf16 MXU inputs vs. f32 HIGHEST reference -> loosened tolerance
    if not bool(jnp.allclose(out, ref, atol=2e-2, rtol=2e-2)):
        err = float(jnp.max(jnp.abs(out - ref)))
        raise AssertionError(
            f"Pallas SANet output does not match reference (max abs err {err})")
    print("KERNEL_OK")
</pallas_src>

<mosaic_0001>
module attributes {stable_mosaic.version = 11 : i64} {
  func.func @_roll_probe_kernel(%arg0: memref<8x128xf32, #tpu.memory_space<vmem>>, %arg1: memref<8x128xf32, #tpu.memory_space<vmem>>) attributes {dimension_semantics = [], scalar_prefetch = 0 : i64, scratch_operands = 0 : i64, tpu.core_type = #tpu.core_type<tc>} {
    %c0 = arith.constant 0 : index
    %c0_0 = arith.constant 0 : index
    %0 = vector.load %arg0[%c0, %c0_0] : memref<8x128xf32, #tpu.memory_space<vmem>>, vector<8x128xf32>
    %c1_i32 = arith.constant 1 : i32
    %1 = tpu.dynamic_rotate %0 by %c1_i32 dim 1 : vector<8x128xf32>, i32 -> vector<8x128xf32>
    %c0_1 = arith.constant 0 : index
    %c0_2 = arith.constant 0 : index
    %2 = vector.load %arg1[%c0_1, %c0_2] : memref<8x128xf32, #tpu.memory_space<vmem>>, vector<8x128xf32>
    tpu.vector_store %arg1[%c0_1, %c0_2], %1 {strides = array<i32>} : memref<8x128xf32, #tpu.memory_space<vmem>>, vector<8x128xf32>,
    return
  }
}

</mosaic_0001>

<bundles_post_ra>
// kernel: tpu_custom_call.1
= control target key start
LH: loop header
LB: loop body
LE: loop exit
PB: predicated region body
PF: predicated region fallthrough
CT: control target
= control target key end

     0   :  { %6 = vsyncpa [#allocation3], 0  ;;  %s118_s0 = inlined_call_operand.hbm [shape: f32[8,128], index: 0, kind: input, shape index: {}]   ;;  %s119_s1 = inlined_call_operand.hbm [shape: f32[8,128], index: 1, kind: output, shape index: {}]  }
   0x1   :  { %7 = vsyncpa [#allocation4], 0  ;;  %s13_s8 = sshll.u32 %s118_s0, 4  ;;  %s99_s9 = smov [#allocation2]   ;;  %s14_s8 = int_to_ptr.hbm [resolvable:$true] %s13_s8 }
   0x2   :  { %s15_s10 = sshll.u32 %s99_s9, 4  ;;  %s16_s10 = int_to_ptr.vmem [resolvable:$true] %s15_s10 }
   0x3   :  { %18 = dma.hbm_to_vmem [thread:$0]  %s14_s8, 128, %s16_s10, [#allocation3]  }
   0x4   :  { %95 = dma.done.wait [#allocation3], 128  }
   0x5   :  { %96 = vsyncadd [#allocation3], 4294967168  ;;  %v23_v0 = vld [vmem:[#allocation2] sm:$0xff]  ;;  %s100_s11 = smov 1   ;;  %s101_s12 = smov [#allocation5]  }
   0x6   :  { %24 = vrot.lane.b32.xlu0 %v23_v0, %s100_s11  ;;  %s32_s13 = sshll.u32 %s101_s12, 4  ;;  %s34_s16 = sshll.u32 %s119_s1, 4  ;;  %s33_s13 = int_to_ptr.vmem [resolvable:$true] %s32_s13  ;;  %s35_s16 = int_to_ptr.hbm [resolvable:$true] %s34_s16 }
  0x78   :  { %v25_v1 = vpop.permute.xlu0 %24 }
  0x79   :  { %26 = vst [vmem:[#allocation5] sm:$0xff] %v25_v1 }
  0x7a   :  { %37 = dma.vmem_to_hbm [thread:$0]  %s33_s13, 128, %s35_s16, [#allocation4]  }
  0x7b   :  { %97 = dma.done.wait [#allocation4], 128  }
  0x7c   :  { %98 = vsyncadd [#allocation4], 4294967168 }
  0x7d   :  { %42 = vsyncpa [#allocation3], 1 }
  0x7e   :  { %43 = vsyncpa [#allocation4], 1 }

</bundles_post_ra>
